<compile_context>
chip_gen: v5e
topology: v5e:2x2
jax: 0.10.0
libtpu: 0.0.40
codegen_flags: <defaults>
</compile_context>

<pallas_src>
import math
import jax
import jax.numpy as jnp
from jax.experimental import pallas as pl
from jax.experimental.pallas import tpu as pltpu


def _glorot(key, shape):
    # torch_geometric glorot: uniform(-a, a), a = sqrt(6 / (size(-2) + size(-1)))
    a = math.sqrt(6.0 / (shape[-2] + shape[-1]))
    return jax.random.uniform(key, shape, jnp.float32, minval=-a, maxval=a)


def _attention_kernel(nv_ref, sv_ref, asw_ref, anw_ref, wbd_ref, gb_ref, o_ref):
    # nv_ref / sv_ref : (tE, H*C)  lane-dense edge tiles (VMEM, streamed)
    # asw_ref/anw_ref : (1, H*C)   flattened attention weights (VMEM, resident)
    # wbd_ref         : (H*C, H)   block-diagonal Linear(C, 1) weight (VMEM, resident)
    # gb_ref          : (1,)       Linear bias (SMEM scalar)
    # o_ref           : (tE, H)    lane-dense output tile
    alpha = jnp.tanh(sv_ref[...] * asw_ref[...] + nv_ref[...] * anw_ref[...])   # VPU/EUP
    # Per-head channel reduction on the MXU (block-diagonal weight keeps heads separate),
    # instead of an XLU cross-lane sum.
    out = jnp.dot(alpha, wbd_ref[...],
                  precision=jax.lax.Precision.HIGHEST,
                  preferred_element_type=jnp.float32)                            # (tE, H)
    o_ref[...] = out + gb_ref[0]


def generalized_linear_attention(neighbor_vecs, self_vecs,
                                 att_self_weight, att_neighbor_weight,
                                 general_weight, general_bias,
                                 *, edge_tile=4096):
    E, H, C = neighbor_vecs.shape
    HC = H * C

    # Flatten trailing dims so each edge row is one dense 128-lane stripe
    # (no (H, C)-slab vreg padding).  bf16 inputs would halve the HBM read
    # stream further if the model tolerates it; keep f32 here.
    nv = neighbor_vecs.reshape(E, HC).astype(jnp.float32)
    sv = self_vecs.reshape(E, HC).astype(jnp.float32)
    asw = att_self_weight.reshape(1, HC).astype(jnp.float32)
    anw = att_neighbor_weight.reshape(1, HC).astype(jnp.float32)

    # Block-diagonal (H*C, H) weight: head h's channels contract against general_weight
    # only in column h, so a single MXU matmul performs all per-head Linear(C, 1) sums.
    gw = general_weight.reshape(C).astype(jnp.float32)
    w_bd = (jnp.eye(H, dtype=jnp.float32)[:, None, :] * gw[None, :, None]).reshape(HC, H)
    gb = general_bias.reshape(1).astype(jnp.float32)

    # Large edge tiles amortize the ~0.35 us per-grid-step overhead; clamp for small E and
    # pad the tail so arbitrary E never forces a tiny tile (padded rows are sliced off).
    tile = min(edge_tile, pl.cdiv(E, 8) * 8)
    tile = max(8, pl.cdiv(tile, 8) * 8)          # keep sublane-aligned
    E_pad = pl.cdiv(E, tile) * tile
    if E_pad != E:
        nv = jnp.pad(nv, ((0, E_pad - E), (0, 0)))
        sv = jnp.pad(sv, ((0, E_pad - E), (0, 0)))
    grid = (E_pad // tile,)

    vec_spec = pl.BlockSpec((tile, HC), lambda i: (i, 0))
    att_spec = pl.BlockSpec((1, HC), lambda i: (0, 0))
    wbd_spec = pl.BlockSpec((HC, H), lambda i: (0, 0))
    gb_spec = pl.BlockSpec(memory_space=pltpu.MemorySpace.SMEM)
    out_spec = pl.BlockSpec((tile, H), lambda i: (i, 0))

    # Deliberate VMEM cap: 2 streamed inputs x 2 pipeline buffers + double-buffered output
    # + resident params, with headroom; stays well inside v7x's 64 MiB physical VMEM.
    vmem_bytes = min(4 * tile * HC * 4 + 2 * tile * H * 4 + (4 << 20), 64 << 20)

    out = pl.pallas_call(
        _attention_kernel,
        out_shape=jax.ShapeDtypeStruct((E_pad, H), jnp.float32),
        grid_spec=pltpu.PrefetchScalarGridSpec(
            num_scalar_prefetch=0,
            grid=grid,
            in_specs=[vec_spec, vec_spec, att_spec, att_spec, wbd_spec, gb_spec],
            out_specs=out_spec,
        ),
        compiler_params=pltpu.CompilerParams(
            dimension_semantics=("parallel",),
            vmem_limit_bytes=vmem_bytes),
    )(nv, sv, asw, anw, w_bd, gb)

    # Match the PyTorch module's (E, H, 1) output.
    return out[:E].reshape(E, H, 1)


if __name__ == "__main__":
    key = jax.random.PRNGKey(0)
    k_nv, k_sv, k_as, k_an, k_gw = jax.random.split(key, 5)

    num_heads = 4
    out_channels = 32
    num_edges = 200  # deliberately not a tile multiple to exercise the tail handling

    neighbor_vecs = jax.random.normal(k_nv, (num_edges, num_heads, out_channels), jnp.float32)
    self_vecs = jax.random.normal(k_sv, (num_edges, num_heads, out_channels), jnp.float32)

    # Deterministic parameter init (glorot for weights, zeros for bias), as in reset_parameters().
    att_self_weight = _glorot(k_as, (1, num_heads, out_channels))
    att_neighbor_weight = _glorot(k_an, (1, num_heads, out_channels))
    general_weight = _glorot(k_gw, (1, out_channels))      # nn.Linear(C, 1).weight
    general_bias = jnp.zeros((1,), jnp.float32)            # nn.Linear(C, 1).bias

    # Small edge_tile here just to exercise a multi-block grid + padded tail at demo size;
    # production default is 4096.
    alpha = generalized_linear_attention(
        neighbor_vecs, self_vecs,
        att_self_weight, att_neighbor_weight,
        general_weight, general_bias,
        edge_tile=64)
    alpha = jax.block_until_ready(alpha)

    # Pure-JAX reference check of the forward semantics.
    ref = jnp.tanh(self_vecs * att_self_weight + neighbor_vecs * att_neighbor_weight)
    ref = jnp.sum(ref * general_weight[None, :, :], axis=-1, keepdims=True) + general_bias[0]
    assert alpha.shape == (num_edges, num_heads, 1)
    assert jnp.allclose(alpha, ref, atol=1e-5, rtol=1e-5)

    print("KERNEL_OK")
</pallas_src>

<mosaic_0001>
module attributes {stable_mosaic.version = 11 : i64} {
  func.func @_attention_kernel(%arg0: i32, %arg1: memref<64x128xf32, #tpu.memory_space<vmem>>, %arg2: memref<64x128xf32, #tpu.memory_space<vmem>>, %arg3: memref<1x128xf32, #tpu.memory_space<vmem>>, %arg4: memref<1x128xf32, #tpu.memory_space<vmem>>, %arg5: memref<128x4xf32, #tpu.memory_space<vmem>>, %arg6: memref<1xf32, #tpu.memory_space<smem>>, %arg7: memref<64x4xf32, #tpu.memory_space<vmem>>) attributes {dimension_semantics = [#tpu.dimension_semantics<parallel>], iteration_bounds = array<i64: 4>, scalar_prefetch = 0 : i64, scratch_operands = 0 : i64, tpu.core_type = #tpu.core_type<tc>, window_params = [{transform_indices = @transform_0, window_bounds = array<i64: 64, 128>}, {transform_indices = @transform_1, window_bounds = array<i64: 64, 128>}, {pipeline_mode = #tpu.pipeline_mode<synchronous>, transform_indices = @transform_2, window_bounds = array<i64: 1, 128>}, {pipeline_mode = #tpu.pipeline_mode<synchronous>, transform_indices = @transform_3, window_bounds = array<i64: 1, 128>}, {pipeline_mode = #tpu.pipeline_mode<synchronous>, transform_indices = @transform_4, window_bounds = array<i64: 128, 4>}, {transform_indices = @transform_5, window_bounds = array<i64: 1>}, {transform_indices = @transform_6, window_bounds = array<i64: 64, 4>}]} {
    %c0 = arith.constant 0 : index
    %c0_0 = arith.constant 0 : index
    %0 = vector.load %arg2[%c0, %c0_0] : memref<64x128xf32, #tpu.memory_space<vmem>>, vector<64x128xf32>
    %c0_1 = arith.constant 0 : index
    %c0_2 = arith.constant 0 : index
    %1 = vector.load %arg3[%c0_1, %c0_2] : memref<1x128xf32, #tpu.memory_space<vmem>>, vector<1x128xf32>
    %2 = vector.broadcast %1 : vector<1x128xf32> to vector<64x128xf32>
    %3 = arith.mulf %0, %2 : vector<64x128xf32>
    %c0_3 = arith.constant 0 : index
    %c0_4 = arith.constant 0 : index
    %4 = vector.load %arg1[%c0_3, %c0_4] : memref<64x128xf32, #tpu.memory_space<vmem>>, vector<64x128xf32>
    %c0_5 = arith.constant 0 : index
    %c0_6 = arith.constant 0 : index
    %5 = vector.load %arg4[%c0_5, %c0_6] : memref<1x128xf32, #tpu.memory_space<vmem>>, vector<1x128xf32>
    %6 = vector.broadcast %5 : vector<1x128xf32> to vector<64x128xf32>
    %7 = arith.mulf %4, %6 : vector<64x128xf32>
    %8 = arith.addf %3, %7 : vector<64x128xf32>
    %9 = math.tanh %8 : vector<64x128xf32>
    %c0_7 = arith.constant 0 : index
    %c0_8 = arith.constant 0 : index
    %10 = vector.load %arg5[%c0_7, %c0_8] : memref<128x4xf32, #tpu.memory_space<vmem>>, vector<128x4xf32>
    %cst = arith.constant dense<0.000000e+00> : vector<64x4xf32>
    %11 = tpu.matmul %9, %10, %cst {dimension_numbers = #tpu.dot_dimension_numbers<[1], [0], [0], [1], [0, 0, 1, 1], [], []>, precision = #tpu.contract_precision<fp32>} : vector<64x128xf32>, vector<128x4xf32>, vector<64x4xf32> -> vector<64x4xf32>
    %c0_9 = arith.constant 0 : index
    %12 = memref.load %arg6[%c0_9] : memref<1xf32, #tpu.memory_space<smem>>
    %13 = vector.broadcast %12 : f32 to vector<64x4xf32>
    %14 = arith.addf %11, %13 : vector<64x4xf32>
    %c0_10 = arith.constant 0 : index
    %c0_11 = arith.constant 0 : index
    %15 = vector.load %arg7[%c0_10, %c0_11] : memref<64x4xf32, #tpu.memory_space<vmem>>, vector<64x4xf32>
    tpu.vector_store %arg7[%c0_10, %c0_11], %14 {strides = array<i32>} : memref<64x4xf32, #tpu.memory_space<vmem>>, vector<64x4xf32>,
    return
  }
  func.func @transform_0(%arg0: i32) -> (i32, i32) {
    %c0_i32 = arith.constant 0 : i32
    %c0_i32_0 = arith.constant 0 : i32
    return %arg0, %c0_i32 : i32, i32
  }
  func.func @transform_1(%arg0: i32) -> (i32, i32) {
    %c0_i32 = arith.constant 0 : i32
    %c0_i32_0 = arith.constant 0 : i32
    return %arg0, %c0_i32 : i32, i32
  }
  func.func @transform_2(%arg0: i32) -> (i32, i32) {
    %c0_i32 = arith.constant 0 : i32
    %c0_i32_0 = arith.constant 0 : i32
    %c0_i32_1 = arith.constant 0 : i32
    return %c0_i32, %c0_i32_0 : i32, i32
  }
  func.func @transform_3(%arg0: i32) -> (i32, i32) {
    %c0_i32 = arith.constant 0 : i32
    %c0_i32_0 = arith.constant 0 : i32
    %c0_i32_1 = arith.constant 0 : i32
    return %c0_i32, %c0_i32_0 : i32, i32
  }
  func.func @transform_4(%arg0: i32) -> (i32, i32) {
    %c0_i32 = arith.constant 0 : i32
    %c0_i32_0 = arith.constant 0 : i32
    %c0_i32_1 = arith.constant 0 : i32
    return %c0_i32, %c0_i32_0 : i32, i32
  }
  func.func @transform_5(%arg0: i32) -> i32 {
    %c0_i32 = arith.constant 0 : i32
    %c0_i32_0 = arith.constant 0 : i32
    return %c0_i32 : i32
  }
  func.func @transform_6(%arg0: i32) -> (i32, i32) {
    %c0_i32 = arith.constant 0 : i32
    %c0_i32_0 = arith.constant 0 : i32
    return %arg0, %c0_i32 : i32, i32
  }
}

</mosaic_0001>

<bundles_post_ra>
// kernel: tpu_custom_call.1
= control target key start
LH: loop header
LB: loop body
LE: loop exit
PB: predicated region body
PF: predicated region fallthrough
CT: control target
= control target key end

     0   :  { %s1962_s0 = inlined_call_operand.hbm [shape: f32[256,128], index: 0, kind: input, shape index: {}]   ;;  %s1963_s1 = inlined_call_operand.hbm [shape: f32[256,128], index: 1, kind: input, shape index: {}]   ;;  %s1964_s2 = inlined_call_operand.vmem [shape: f32[1,128], index: 2, kind: input, shape index: {}]   ;;  %s1965_s3 = inlined_call_operand.vmem [shape: f32[1,128], index: 3, kind: input, shape index: {}]   ;;  %s1966_s4 = inlined_call_operand.vmem [shape: f32[128,4], index: 4, kind: input, shape index: {}]   ;;  %s1967_s5 = inlined_call_operand.<no memory space> [shape: f32[1], index: 5, kind: input, shape index: {}]   ;;  %s1968_s6 = inlined_call_operand.vmem [shape: f32[256,4], index: 6, kind: output, shape index: {}]  }
   0x1   :  { %11 = sst [smem:[#allocation2]] %s1967_s5 }
   0x2   :  { %12 = vsyncpa [#allocation4], 0 }
   0x3   :  { %14 = vsyncpa [#allocation4 + $0x1], 0 }
   0x4   :  { %15 = vsyncpa [#allocation6], 0 }
   0x5   :  { %17 = vsyncpa [#allocation6 + $0x1], 0  ;;  %s1306_s23 = smov 0   ;;  %s1308_s24 = smov 0  }
   0x6   :  { %s1310_s25 = smov 0   ;;  %s1312_s26 = smov 0  }
   0x7 LB: > { %s1051_s5 = sadd.s32 4294967295, %s1264_s26   ;;  %s1326_s27 = sadd.s32 1, %s1264_s26   ;;  %s1264_s26 = sphi %s1312_s26, %s1998_s26   ;;  %s1260_s25 = sphi %s1310_s25, %s1997_s25   ;;  %s1256_s24 = sphi %s1308_s24, %s1996_s24   ;;  %s1252_s23 = sphi %s1306_s23, %s1995_s23  }
   0x8   : > { %s27_s28 = ssub.s32 %s1264_s26, %s1326_s27  ;;  %s30_s29 = sadd.s32 1, %s1260_s25 }
   0x9   : > { %p28_p0 = scmp.eq.s32.totalorder %s27_s28, 0  ;;  %p37_p1 = scmp.ne.s32.totalorder %s1260_s25, %s1256_s24 }
   0xa   : > { %p38_p2 = scmp.eq.s32.totalorder %s1264_s26, 0  ;;  %p43_p3 = scmp.ne.s32.totalorder %s1256_s24, %s1252_s23 }
   0xb   : > { %s1336_s30 = scalar_select %p28_p0, %s1260_s25, %s30_s29  }
   0xc   : > { %p1338_p4 = por %p38_p2, %p37_p1  ;;  %p44_p5 = scmp.eq.s32.totalorder %s1051_s5, 0 }
   0xd   : > { %p1113_p6 = scmp.lt.s32.totalorder %s1264_s26, 4  ;;  %s1350_s9 = sand.u32 1, %s1260_s25  }
   0xe   : > { %p1345_p7 = por %p44_p5, %p43_p3  ;;  %s1055_s10 = sshll.u32 %s1350_s9, 6 }
   0xf   : > { %s1068_s11 = sshll.u32 %s1264_s26, 6  ;;  %s219_s15 = scalar_lea.vmem [#allocation3], %s1055_s10 }
  0x10   : > { %s224_s14 = scalar_lea.hbm %s1962_s0, %s1068_s11  ;;  %s227_s16 = sshll.u32 %s219_s15, 4  ;;  %s228_s16 = int_to_ptr.vmem [resolvable:$true] %s227_s16 }
  0x11   : > { %s225_s17 = sshll.u32 %s224_s14, 4  ;;  %p1363_p8 = pnand %p1113_p6, %p1338_p4  ;;  %s226_s17 = int_to_ptr.hbm [resolvable:$true] %s225_s17 }
  0x12   : > { %p1061_p9 = scmp.ge.s32.totalorder %s1264_s26, 1  ;;  %s216_s19 = scalar_lea.sflag [#allocation4], %s1350_s9 }
  0x13   : > { %s1166_s20 = sshra.s32 %s226_s17, 4  ;;  %p1170_p11 = pneg %p1363_p8  ;;  %s1167_s20 = int_to_ptr.hbm [resolvable:$true] %s1166_s20 }
  0x14   : > { %s1168_s21 = scalar_lea.hbm %s1167_s20, 64  ;;  %s1173_s28 = scalar_lea.hbm %s1962_s0, 256 }
  0x15   : > { %p1169_p10 = scmp.ne.s32.totalorder %s1167_s20, %s1168_s21  ;;  %p1174_p0 = scmp.lt.s32.totalorder %s1167_s20, %s1962_s0 }
  0x16   : > { %p1175_p1 = scmp.lt.s32.totalorder %s1173_s28, %s1168_s21 }
  0x17   : > { %p1171_p12 = pnand %p1170_p11, %p1169_p10 }
  0x18   : > { %p1176_p2 = por %p1175_p1, %p1174_p0 }
  0x19   : > { %p1172_p13 = pneg %p1171_p12 }
  0x1b   : > { %p1177_p3 = pnand %p1176_p2, %p1172_p13 }
  0x1d   : > { %1180 = shalt.err (!%p1177_p3)
}
  0x1e   : > { %s1266_s12 = smov 128   ;;  %s1267_s13 = smov 8  }
  0x1f   : > { %1109 = dma.hbm_to_vmem [thread:$0]  (!%p1363_p8), %s226_s17, 1024, %s228_s16, %s216_s19, %s1266_s12, %s1266_s12, %s1267_s13  }
  0x20   : > { %p257_p4 = scmp.lt.s32.totalorder %s1264_s26, 5  ;;  %s246_s20 = scalar_lea.hbm %s1963_s1, %s1068_s11 }
  0x21   : > { %s247_s22 = sshll.u32 %s246_s20, 4  ;;  %s241_s23 = scalar_lea.vmem [#allocation5], %s1055_s10  ;;  %s248_s22 = int_to_ptr.hbm [resolvable:$true] %s247_s22 }
  0x22   : > { %p1390_p5 = pnand %p1061_p9, %p257_p4  ;;  %s249_s28 = sshll.u32 %s241_s23, 4  ;;  %s250_s28 = int_to_ptr.vmem [resolvable:$true] %s249_s28 }
  0x23   : > { %s238_s29 = scalar_lea.sflag [#allocation6], %s1350_s9  ;;  %s1196_s7 = sshra.s32 %s248_s22, 4  ;;  %s1197_s7 = int_to_ptr.hbm [resolvable:$true] %s1196_s7 }
  0x24   : > { %s1198_s16 = scalar_lea.hbm %s1197_s7, 64  ;;  %s1203_s19 = scalar_lea.hbm %s1963_s1, 256 }
  0x25   : > { %p1199_p6 = scmp.ne.s32.totalorder %s1197_s7, %s1198_s16  ;;  %p1204_p9 = scmp.lt.s32.totalorder %s1197_s7, %s1963_s1 }
  0x26   : > { %p1205_p13 = scmp.lt.s32.totalorder %s1203_s19, %s1198_s16 }
  0x27   : > { %p1201_p10 = pnand %p1199_p6, %p1170_p11 }
  0x28   : > { %p1206_p0 = por %p1205_p13, %p1204_p9 }
  0x29   : > { %p1202_p12 = pneg %p1201_p10 }
  0x2b   : > { %p1207_p1 = pnand %p1206_p0, %p1202_p12 }
  0x2d   : > { %1210 = shalt.err (!%p1207_p1)
}
  0x2e   : > { %1112 = dma.hbm_to_vmem [thread:$0]  (!%p1363_p8), %s248_s22, 1024, %s250_s28, %s238_s29, %s1266_s12, %s1266_s12, %s1267_s13  }
  0x2f   : > { %261 = sbr.rel (%p1390_p5) target bundleno = 326 (0x146), region = 44  ;;  %s263_s9 = sand.u32 (!%p1390_p5), 1, %s1256_s24  }
  0x30   : > { %s1062_s10 = sshll.u32 (!%p1390_p5), %s263_s9, 6  ;;  %s264_s20 = scalar_lea.sflag (!%p1390_p5), [#allocation4], %s263_s9 }
  0x31   : > { %s1411_s23 = scalar_lea.vmem (!%p1390_p5), [#allocation3], %s1062_s10 }
  0x34   : > { %1243 = dma.done.wait (%p1345_p7), %s264_s20, 1024  }
  0x35   : > { %1245 = vsyncadd (%p1345_p7), %s264_s20, 4294966272  ;;  %s274_s7 = scalar_lea.sflag [#allocation6], %s263_s9  ;;  %s1417_s16 = scalar_lea.vmem [#allocation5], %s1062_s10 }
  0x36   : > { %1247 = dma.done.wait (%p1345_p7), %s274_s7, 1024  }
  0x37   : > { %1249 = vsyncadd (%p1345_p7), %s274_s7, 4294966272  ;;  %v391_v0 = vld [vmem:[%s1966_s4 + $0x78] sm:$0xff]  ;;  %v390_v1 = vld [vmem:[%s1966_s4 + $0x70] sm:$0xff]  ;;  %vm952_vm0 = vcmask 31744  }
  0x38   : > { %v389_v2 = vld [vmem:[%s1966_s4 + $0x68] sm:$0xff]  ;;  %v1432_v3 = vand.u32 4294901760, %v391_v0  ;;  %v1434_v4 = vand.u32 4294901760, %v390_v1  ;;  %v388_v6 = vld [vmem:[%s1966_s4 + $0x60] sm:$0xff]  ;;  %v387_v7 = vld [vmem:[%s1966_s4 + $0x58] sm:$0xff] }
  0x39   : > { %v1436_v5 = vand.u32 4294901760, %v389_v2  ;;  %v386_v8 = vld [vmem:[%s1966_s4 + $0x50] sm:$0xff]  ;;  %v1447_v9 = vand.u32 4294901760, %v388_v6  ;;  %v1449_v10 = vand.u32 4294901760, %v387_v7  ;;  %v385_v12 = vld [vmem:[%s1966_s4 + $0x48] sm:$0xff]  ;;  %v384_v13 = vld [vmem:[%s1966_s4 + $0x40] sm:$0xff] }
  0x3a   : > { %v1451_v11 = vand.u32 4294901760, %v386_v8  ;;  %1070 = vmatpush.msra.mxu2 %v1432_v3  ;;  %v1461_v14 = vsub.f32 %v391_v0, %v1432_v3  ;;  %v1464_v15 = vsub.f32 %v390_v1, %v1434_v4  ;;  %395 = vmatpush.msra.mxu0 %v1432_v3  ;;  %v1470_v17 = vand.u32 4294901760, %v385_v12  ;;  %v383_v19 = vld [vmem:[%s1966_s4 + $0x38] sm:$0xff]  ;;  %v382_v25 = vld [vmem:[%s1966_s4 + $0x30] sm:$0xff]  ;;  %v381_v26 = vld [vmem:[%s1966_s4 + $0x28] sm:$0xff] }
  0x3b   : > { %v1467_v16 = vsub.f32 %v389_v2, %v1436_v5  ;;  %v1473_v18 = vsub.f32 %v388_v6, %v1447_v9  ;;  %v1479_v20 = vsub.f32 %v387_v7, %v1449_v10  ;;  %v1485_v24 = vand.u32 4294901760, %v384_v13  ;;  %v380_v38 = vld [vmem:[%s1966_s4 + $0x20] sm:$0xff]  ;;  %v379_v52 = vld [vmem:[%s1966_s4 + $0x18] sm:$0xff]  ;;  %v378_v58 = vld [vmem:[%s1966_s4 + $0x10] sm:$0xff] }
  0x3c   : > { %1071 = vmatpush.msra.mxu2 %v1434_v4  ;;  %v493_v21 = vand.u32 4294901760, %v1461_v14  ;;  %v499_v22 = vand.u32 4294901760, %v1464_v15  ;;  %397 = vmatpush.msra.mxu0 %v1434_v4  ;;  %v1497_v29 = vsub.f32 %v386_v8, %v1451_v11  ;;  %v1509_v33 = vand.u32 4294901760, %v383_v19  ;;  %v1537_v44 = vld [vmem:[%s1964_s2] ss:$0 sm:$0xff]  ;;  %v377_v1 = vld [vmem:[%s1966_s4 + $0x8] sm:$0xff] }
  0x3d   : > { %v505_v23 = vand.u32 4294901760, %v1467_v16  ;;  %v511_v27 = vand.u32 4294901760, %v1473_v18  ;;  %v517_v28 = vand.u32 4294901760, %v1479_v20  ;;  %v1515_v35 = vand.u32 4294901760, %v382_v25  ;;  %v324_v49 = vld [vmem:[%s1417_s16 + $0x20] sm:$0xff] }
  0x3e   : > { %1072 = vmatpush.msra.mxu2 %v1436_v5  ;;  %v494_v30 = vsub.f32 %v1461_v14, %v493_v21  ;;  %v500_v31 = vsub.f32 %v1464_v15, %v499_v22  ;;  %399 = vmatpush.msra.mxu0 %v1436_v5  ;;  %v1517_v36 = vand.u32 4294901760, %v381_v26  ;;  %v1520_v37 = vsub.f32 %v385_v12, %v1470_v17  ;;  %v1550_v50 = vld [vmem:[%s1965_s3] ss:$0 sm:$0xff] }
  0x3f   : > { %v506_v32 = vsub.f32 %v1467_v16, %v505_v23  ;;  %v512_v34 = vsub.f32 %v1473_v18, %v511_v27  ;;  %v523_v41 = vand.u32 4294901760, %v1497_v29  ;;  %v1529_v42 = vsub.f32 %v384_v13, %v1485_v24  ;;  %v344_v54 = vld [vmem:[%s1411_s23 + $0x20] sm:$0xff] }
  0x40   : > { %1073 = vmatpush.msra.mxu2 %v1447_v9  ;;  %v495_v39 = vand.u32 4294901760, %v494_v30  ;;  %v501_v40 = vand.u32 4294901760, %v500_v31  ;;  %401 = vmatpush.msra.mxu0 %v1447_v9  ;;  %v518_v43 = vsub.f32 %v1479_v20, %v517_v28  ;;  %v1973_v46 = vand.u32 4294901760, %v1520_v37  ;;  %v325_v30 = vld [vmem:[%s1417_s16 + $0x28] sm:$0xff] }
  0x41   : > { %v507_v45 = vand.u32 4294901760, %v506_v32  ;;  %v1541_v47 = vand.u32 4294901760, %v380_v38  ;;  %v1544_v48 = vsub.f32 %v383_v19, %v1509_v33  ;;  %v1972_v51 = vand.u32 4294901760, %v1529_v42 }
  0x42   : > { %1074 = vmatpush.msra.mxu2 %v1449_v10  ;;  %1086 = vmatpush.msra.mxu3 %v495_v39  ;;  %v1558_v53 = vsub.f32 %v382_v25, %v1515_v35  ;;  %v513_v55 = vand.u32 4294901760, %v512_v34  ;;  %v524_v56 = vsub.f32 %v1497_v29, %v523_v41  ;;  %v1570_v59 = vsub.f32 %v381_v26, %v1517_v36  ;;  %v376_v25 = vld [vmem:[%s1966_s4] sm:$0xff]  ;;  %v345_v34 = vld [vmem:[%s1411_s23 + $0x28] sm:$0xff] }
  0x43   : > { %496 = vmatpush.msra.mxu1 %v495_v39  ;;  %403 = vmatpush.msra.mxu0 %v1449_v10  ;;  %v1971_v57 = vand.u32 4294901760, %v1544_v48  ;;  %v519_v60 = vand.u32 4294901760, %v518_v43  ;;  %v336_v62 = vmul.f32 %v1537_v44, %v324_v49  ;;  %v530_v63 = vsub.f32 %v1520_v37, %v1973_v46  ;;  %v326_v49 = vld [vmem:[%s1417_s16 + $0x30] sm:$0xff] }
  0x44   : > { %1075 = vmatpush.msra.mxu2 %v1451_v11  ;;  %1087 = vmatpush.msra.mxu3 %v501_v40  ;;  %v1969_v61 = vand.u32 4294901760, %v1558_v53  ;;  %v1579_v0 = vand.u32 4294901760, %v379_v52  ;;  %v1585_v2 = vsub.f32 %v380_v38, %v1541_v47  ;;  %v356_v6 = vmul.f32 %v1550_v50, %v344_v54  ;;  %v320_v38 = vld [vmem:[%s1417_s16] sm:$0xff] }
  0x45   : > { %502 = vmatpush.msra.mxu1 %v501_v40  ;;  %405 = vmatpush.msra.mxu0 %v1451_v11  ;;  %v1591_v7 = vsub.f32 %v1529_v42, %v1972_v51  ;;  %v1593_v8 = vand.u32 4294901760, %v378_v58  ;;  %v525_v12 = vand.u32 4294901760, %v524_v56  ;;  %v1600_v13 = vsub.f32 %v1544_v48, %v1971_v57  ;;  %v327_v57 = vld [vmem:[%s1417_s16 + $0x38] sm:$0xff] }
  0x46   : > { %1076 = vmatpush.msra.mxu2 %v1470_v17  ;;  %1088 = vmatpush.msra.mxu3 %v507_v45  ;;  %v1970_v19 = vand.u32 4294901760, %v1570_v59  ;;  %v364_v26 = vadd.f32 %v356_v6, %v336_v62  ;;  %v1610_v31 = vsub.f32 %v1558_v53, %v1969_v61  ;;  %v1612_v32 = vand.u32 4294901760, %v377_v1 }
  0x47   : > { %508 = vmatpush.msra.mxu1 %v507_v45  ;;  %407 = vmatpush.msra.mxu0 %v1470_v17  ;;  %v531_v39 = vand.u32 4294901760, %v530_v63  ;;  %v1974_v40 = vand.u32 4294901760, %v1585_v2  ;;  %v1620_v43 = vsub.f32 %v379_v52, %v1579_v0  ;;  %v340_v45 = vld [vmem:[%s1411_s23] sm:$0xff]  ;;  %v537_v54 = vand.u32 4294901760, %v1591_v7  ;;  %v346_v63 = vld [vmem:[%s1411_s23 + $0x30] sm:$0xff] }
  0x48   : > { %1077 = vmatpush.msra.mxu2 %v1485_v24  ;;  %1089 = vmatpush.msra.mxu3 %v513_v55  ;;  %1150 = vtanh.f32 %v364_v26  ;;  %v1629_v56 = vsub.f32 %v378_v58, %v1593_v8  ;;  %v337_v62 = vmul.f32 %v1537_v44, %v325_v30  ;;  %v543_v52 = vand.u32 4294901760, %v1600_v13  ;;  %v321_v58 = vld [vmem:[%s1417_s16 + $0x8] sm:$0xff] }
  0x49   : > { %514 = vmatpush.msra.mxu1 %v513_v55  ;;  %409 = vmatpush.msra.mxu0 %v1485_v24  ;;  %v1625_v55 = vand.u32 4294901760, %v376_v25  ;;  %v357_v6 = vmul.f32 %v1550_v50, %v345_v34  ;;  %v332_v7 = vmul.f32 %v1537_v44, %v320_v38  ;;  %v341_v26 = vld [vmem:[%s1411_s23 + $0x8] sm:$0xff]  ;;  %v549_v30 = vand.u32 4294901760, %v1610_v31 }
  0x4a   : > { %1078 = vmatpush.msra.mxu2 %v1509_v33  ;;  %1090 = vmatpush.msra.mxu3 %v519_v60  ;;  %v1647_v61 = vsub.f32 %v377_v1, %v1612_v32  ;;  %v352_v13 = vmul.f32 %v1550_v50, %v340_v45  ;;  %v1656_v34 = vsub.f32 %v1585_v2, %v1974_v40  ;;  %v347_v1 = vld [vmem:[%s1411_s23 + $0x38] sm:$0xff]  ;;  %v1977_v45 = vand.u32 4294901760, %v1629_v56 }
  0x4b   : > { %520 = vmatpush.msra.mxu1 %v519_v60  ;;  %411 = vmatpush.msra.mxu0 %v1509_v33  ;;  %v1638_v60 = vsub.f32 %v1570_v59, %v1970_v19  ;;  %v338_v19 = vmul.f32 %v1537_v44, %v326_v49  ;;  %v365_v31 = vadd.f32 %v357_v6, %v337_v62 }
  0x4c   : > { %1079 = vmatpush.msra.mxu2 %v1515_v35  ;;  %1091 = vmatpush.msra.mxu3 %v525_v12  ;;  %v358_v38 = vmul.f32 %v1550_v50, %v346_v63  ;;  %v360_v49 = vadd.f32 %v352_v13, %v332_v7  ;;  %v333_v51 = vmul.f32 %v1537_v44, %v321_v58  ;;  %v342_v13 = vld [vmem:[%s1411_s23 + $0x10] sm:$0xff] }
  0x4d   : > { %526 = vmatpush.msra.mxu1 %v525_v12  ;;  %413 = vmatpush.msra.mxu0 %v1515_v35  ;;  %v1979_v12 = vand.u32 4294901760, %v1620_v43  ;;  %v353_v46 = vmul.f32 %v1550_v50, %v341_v26  ;;  %v1667_v62 = vsub.f32 %v376_v25, %v1625_v55  ;;  %1152 = vtanh.f32 %v365_v31  ;;  %v322_v26 = vld [vmem:[%s1417_s16 + $0x10] sm:$0xff] }
  0x4e   : > { %1080 = vmatpush.msra.mxu2 %v1517_v36  ;;  %1092 = vmatpush.msra.mxu3 %v531_v39  ;;  %v1151_v40 = vpop.eup %1150  ;;  %v339_v63 = vmul.f32 %v1537_v44, %v327_v57  ;;  %1154 = vtanh.f32 %v360_v49  ;;  %v359_v58 = vmul.f32 %v1550_v50, %v347_v1  ;;  %v555_v25 = vand.u32 4294901760, %v1638_v60 }
  0x4f   : > { %532 = vmatpush.msra.mxu1 %v531_v39  ;;  %415 = vmatpush.msra.mxu0 %v1517_v36  ;;  %v366_v39 = vadd.f32 %v358_v38, %v338_v19  ;;  %v1670_v6 = vand.u32 4294901760, %v1151_v40  ;;  %v361_v7 = vadd.f32 %v353_v46, %v333_v51  ;;  %v566_v57 = vsub.f32 %v1620_v43, %v1979_v12 }
  0x50   : > { %1081 = vmatpush.msra.mxu2 %v1541_v47  ;;  %1093 = vmatpush.msra.mxu3 %v537_v54  ;;  %v1976_v19 = vand.u32 4294901760, %v1647_v61  ;;  %v367_v51 = vadd.f32 %v359_v58, %v339_v63  ;;  %v572_v60 = vsub.f32 %v1629_v56, %v1977_v45  ;;  %v1978_v31 = vand.u32 4294901760, %v1667_v62  ;;  %v323_v45 = vld [vmem:[%s1417_s16 + $0x18] sm:$0xff]  ;;  %s1064_s16 = sshll.u32 %s1051_s5, 3 }
  0x51   : > { %538 = vmatpush.msra.mxu1 %v537_v54  ;;  %417 = vmatpush.msra.mxu0 %v1541_v47  ;;  %1156 = vtanh.f32 %v366_v39  ;;  %v561_v54 = vand.u32 4294901760, %v1656_v34  ;;  %v1684_v46 = vsub.f32 %v1151_v40, %v1670_v6  ;;  %v334_v38 = vmul.f32 %v1537_v44, %v322_v26  ;;  %p315_p7 = scmp.lt.s32.totalorder %s1064_s16, 31 }
  0x52   : > { %1082 = vmatpush.msra.mxu2 %v1579_v0  ;;  %1094 = vmatpush.msra.mxu3 %v543_v52  ;;  %1158 = vtanh.f32 %v361_v7  ;;  %v354_v34 = vmul.f32 %v1550_v50, %v342_v13  ;;  %v567_v1 = vand.u32 4294901760, %v566_v57  ;;  %v578_v49 = vsub.f32 %v1647_v61, %v1976_v19 }
  0x53   : > { %544 = vmatpush.msra.mxu1 %v543_v52  ;;  %419 = vmatpush.msra.mxu0 %v1579_v0  ;;  %v1975_v40 = vand.u32 4294901760, %v1684_v46  ;;  %v1153_v52 = vpop.eup %1152  ;;  %1160 = vtanh.f32 %v367_v51  ;;  %v573_v58 = vand.u32 4294901760, %v572_v60  ;;  %v584_v26 = vsub.f32 %v1667_v62, %v1978_v31  ;;  %s2000_s16 = smov (!%p315_p7, %s1064_s16), 31 }
  0x54   : > { %1083 = vmatpush.msra.mxu2 %v1593_v8  ;;  %1095 = vmatpush.msra.mxu3 %v549_v30  ;;  %v1155_v39 = vpop.eup %1154  ;;  %v362_v57 = vadd.f32 %v354_v34, %v334_v38  ;;  %v579_v60 = vand.u32 4294901760, %v578_v49  ;;  %v343_v38 = vld [vmem:[%s1411_s23 + $0x18] sm:$0xff]  ;;  %s392_s23 = sld [smem:[#allocation2]]  ;;  %s1065_s13 = sshll.u32 %s2000_s16, 3 }
  0x55   : > { %550 = vmatpush.msra.mxu1 %v549_v30  ;;  %421 = vmatpush.msra.mxu0 %v1593_v8  ;;  %v461_v63 = vsub.f32 %v1684_v46, %v1975_v40  ;;  %v1703_v30 = vand.u32 4294901760, %v1153_v52  ;;  %v1710_v13 = vand.u32 4294901760, %v1155_v39  ;;  %v585_v49 = vand.u32 4294901760, %v584_v26  ;;  %s1918_s21 = scalar_lea.vmem %s1968_s6, %s1065_s13 }
  0x56   : > { %1084 = vmatpush.msra.mxu2 %v1612_v32  ;;  %1096 = vmatpush.msra.mxu3 %v555_v25  ;;  %1162 = vtanh.f32 %v362_v57 }
  0x57   : > { %556 = vmatpush.msra.mxu1 %v555_v25  ;;  %423 = vmatpush.msra.mxu0 %v1612_v32  ;;  %v1157_v7 = vpop.eup %1156  ;;  %v462_v25 = vand.u32 4294901760, %v461_v63  ;;  %v1714_v40 = vsub.f32 %v1153_v52, %v1703_v30  ;;  %v1721_v31 = vsub.f32 %v1155_v39, %v1710_v13  ;;  %v335_v39 = vmul.f32 %v1537_v44, %v323_v45 }
  0x58   : > { %1085 = vmatpush.msra.mxu2 %v1625_v55  ;;  %1097 = vmatpush.msra.mxu3 %v561_v54  ;;  %v1159_v51 = vpop.eup %1158  ;;  %v1716_v19 = vand.u32 4294901760, %v1157_v7 }
  0x59   : > { %562 = vmatpush.msra.mxu1 %v561_v54  ;;  %425 = vmatpush.msra.mxu0 %v1625_v55  ;;  %v1723_v12 = vand.u32 4294901760, %v1159_v51  ;;  %v468_v34 = vand.u32 4294901760, %v1714_v40  ;;  %v1161_v54 = vpop.eup %1160  ;;  %v428_v63 = vand.u32 4294901760, %v1721_v31 }
  0x5a   : > { %622 = vmatpush.msrb.mxu2 %v1461_v14  ;;  %1098 = vmatpush.msra.mxu3 %v567_v1  ;;  %v1728_v52 = vsub.f32 %v1157_v7, %v1716_v19  ;;  %v355_v7 = vmul.f32 %v1550_v50, %v343_v38  ;;  %v1749_v14 = vand.u32 4294901760, %v1161_v54 }
  0x5b   : > { %463 = vmatmul.f32.vlgmr.msra.gmra.mxu2 %v462_v25  ;;  %568 = vmatpush.msra.mxu1 %v567_v1  ;;  %v469_v25 = vsub.f32 %v1714_v40, %v468_v34  ;;  %v1739_v1 = vsub.f32 %v1159_v51, %v1723_v12  ;;  %v429_v44 = vsub.f32 %v1721_v31, %v428_v63 }
  0x5c   : > { %1099 = vmatpush.msra.mxu3 %v573_v58  ;;  %625 = vmatpush.msrb.mxu2 %v1464_v15  ;;  %v476_v26 = vand.u32 4294901760, %v1728_v52  ;;  %v1163_v57 = vpop.eup %1162 }
  0x5d   : > { %574 = vmatpush.msra.mxu1 %v573_v58  ;;  %793 = vmatpush.msrb.mxu0 %v493_v21  ;;  %v470_v45 = vand.u32 4294901760, %v469_v25  ;;  %v430_v21 = vand.u32 4294901760, %v429_v44  ;;  %v436_v50 = vand.u32 4294901760, %v1739_v1  ;;  %v363_v58 = vadd.f32 %v355_v7, %v335_v39 }
  0x5e   : > { %1100 = vmatpush.msra.mxu3 %v579_v60  ;;  %628 = vmatpush.msrb.mxu2 %v1467_v16  ;;  %v477_v15 = vsub.f32 %v1728_v52, %v476_v26 }
  0x5f   : > { %580 = vmatpush.msra.mxu1 %v579_v60  ;;  %797 = vmatpush.msrb.mxu0 %v499_v22  ;;  %v1760_v22 = vsub.f32 %v1161_v54, %v1749_v14  ;;  %v437_v51 = vsub.f32 %v1739_v1, %v436_v50  ;;  %v1770_v60 = vand.u32 4294901760, %v1163_v57  ;;  %1164 = vtanh.f32 %v363_v58 }
  0x60   : > { %1101 = vmatpush.msra.mxu3 %v585_v49  ;;  %631 = vmatpush.msrb.mxu2 %v1473_v18  ;;  %v478_v38 = vand.u32 4294901760, %v477_v15 }
  0x61   : > { %604 = vmatmul.f32.vlgmr.msra.gmra.mxu3 %v1670_v6  ;;  %586 = vmatpush.msra.mxu1 %v585_v49  ;;  %v484_v16 = vand.u32 4294901760, %v1760_v22  ;;  %v1783_v54 = vsub.f32 %v1163_v57, %v1770_v60  ;;  %v1985_v49 = vand.u32 4294901760, %v1529_v42 }
  0x62   : > { %710 = vmatpush.msrb.mxu3 %v1432_v3  ;;  %634 = vmatpush.msrb.mxu2 %v1479_v20 }
  0x63   : > { %471 = vmatmul.f32.gmra.mxu2 %v470_v45  ;;  %431 = vmatmul.f32.vlgmr.msra.gmra.mxu0 %v430_v21  ;;  %v485_v18 = vsub.f32 %v1760_v22, %v484_v16 }
  0x64   : > { %712 = vmatpush.msrb.mxu3 %v1434_v4  ;;  %637 = vmatpush.msrb.mxu2 %v1497_v29 }
  0x65   : > { %588 = vmatmul.f32.vlgmr.msra.gmra.mxu1 %v1710_v13  ;;  %801 = vmatpush.msrb.mxu0 %v505_v23  ;;  %v438_v23 = vand.u32 4294901760, %v437_v51 }
  0x66   : > { %714 = vmatpush.msrb.mxu3 %v1436_v5  ;;  %640 = vmatpush.msrb.mxu2 %v1520_v37 }
  0x67   : > { %888 = vmatpush.msrb.mxu1 %v1432_v3  ;;  %805 = vmatpush.msrb.mxu0 %v511_v27  ;;  %v1165_v3 = vpop.eup %1164 }
  0x68   : > { %716 = vmatpush.msrb.mxu3 %v1447_v9  ;;  %643 = vmatpush.msrb.mxu2 %v1529_v42  ;;  %v1797_v27 = vand.u32 4294901760, %v1165_v3  ;;  %v1988_v42 = vand.u32 4294901760, %v1570_v59 }
  0x69   : > { %608 = vmatmul.f32.gmra.mxu3 %v1703_v30  ;;  %890 = vmatpush.msrb.mxu1 %v1434_v4  ;;  %v444_v4 = vand.u32 4294901760, %v1783_v54 }
  0x6a   : > { %718 = vmatpush.msrb.mxu3 %v1449_v10  ;;  %646 = vmatpush.msrb.mxu2 %v1544_v48  ;;  %v451_v20 = vsub.f32 %v1165_v3, %v1797_v27 }
  0x6b   : > { %479 = vmatmul.f32.gmra.mxu2 %v478_v38  ;;  %892 = vmatpush.msrb.mxu1 %v1436_v5  ;;  %v486_v5 = vand.u32 4294901760, %v485_v18 }
  0x6c   : > { %720 = vmatpush.msrb.mxu3 %v1451_v11  ;;  %649 = vmatpush.msrb.mxu2 %v1558_v53 }
  0x6d   : > { %439 = vmatmul.f32.gmra.mxu0 %v438_v23  ;;  %894 = vmatpush.msrb.mxu1 %v1447_v9  ;;  %v445_v9 = vsub.f32 %v1783_v54, %v444_v4 }
  0x6e   : > { %722 = vmatpush.msrb.mxu3 %v1470_v17  ;;  %652 = vmatpush.msrb.mxu2 %v1570_v59 }
  0x6f   : > { %809 = vmatpush.msrb.mxu0 %v517_v28  ;;  %592 = vmatmul.f32.gmra.mxu1 %v1723_v12  ;;  %v1984_v28 = vand.u32 4294901760, %v1520_v37  ;;  %v446_v29 = vand.u32 4294901760, %v445_v9 }
  0x70   : > { %724 = vmatpush.msrb.mxu3 %v1485_v24  ;;  %655 = vmatpush.msrb.mxu2 %v1585_v2 }
  0x71   : > { %612 = vmatmul.f32.gmra.mxu3 %v1716_v19  ;;  %813 = vmatpush.msrb.mxu0 %v523_v41  ;;  %v452_v41 = vand.u32 4294901760, %v451_v20 }
  0x72   : > { %726 = vmatpush.msrb.mxu3 %v1509_v33  ;;  %658 = vmatpush.msrb.mxu2 %v1620_v43 }
  0x73   : > { %487 = vmatmul.f32.gmra.mxu2 %v486_v5  ;;  %896 = vmatpush.msrb.mxu1 %v1449_v10  ;;  %v1986_v10 = vand.u32 4294901760, %v1544_v48  ;;  %v1993_v48 = vand.u32 4294901760, %v1667_v62 }
  0x74   : > { %728 = vmatpush.msrb.mxu3 %v1515_v35  ;;  %661 = vmatpush.msrb.mxu2 %v1629_v56 }
  0x75   : > { %817 = vmatpush.msrb.mxu0 %v1984_v28  ;;  %898 = vmatpush.msrb.mxu1 %v1451_v11  ;;  %v453_v11 = vsub.f32 %v451_v20, %v452_v41 }
  0x76   : > { %730 = vmatpush.msrb.mxu3 %v1517_v36  ;;  %664 = vmatpush.msrb.mxu2 %v1647_v61 }
  0x77   : > { %821 = vmatpush.msrb.mxu0 %v1985_v49  ;;  %900 = vmatpush.msrb.mxu1 %v1470_v17  ;;  %v1987_v17 = vand.u32 4294901760, %v1558_v53  ;;  %v454_v37 = vand.u32 4294901760, %v453_v11 }
  0x78   : > { %732 = vmatpush.msrb.mxu3 %v1541_v47  ;;  %667 = vmatpush.msrb.mxu2 %v1667_v62 }
  0x79   : > { %447 = vmatmul.f32.gmra.mxu0 %v446_v29  ;;  %616 = vmatmul.f32.gmra.mxu3 %v1749_v14 }
  0x7a   : > { %734 = vmatpush.msrb.mxu3 %v1579_v0  ;;  %825 = vmatpush.msrb.mxu0 %v1986_v10 }
  0x7b   : > { %670 = vmatmul.f32.vlgmr.msrb.gmra.mxu2 %v1721_v31  ;;  %902 = vmatpush.msrb.mxu1 %v1485_v24  ;;  %v1989_v24 = vand.u32 4294901760, %v1585_v2 }
  0x7c   : > { %596 = vmatmul.f32.gmra.mxu1 %v1770_v60  ;;  %736 = vmatpush.msrb.mxu3 %v1593_v8 }
  0x7d   : > { %829 = vmatpush.msrb.mxu0 %v1987_v17  ;;  %904 = vmatpush.msrb.mxu1 %v1509_v33  ;;  %v1990_v33 = vand.u32 4294901760, %v1620_v43 }
  0x7e   : > { %738 = vmatpush.msrb.mxu3 %v1612_v32 }
  0x7f   : > { %833 = vmatpush.msrb.mxu0 %v1988_v42  ;;  %906 = vmatpush.msrb.mxu1 %v1515_v35  ;;  %v1991_v35 = vand.u32 4294901760, %v1629_v56 }
  0x80   : > { %740 = vmatpush.msrb.mxu3 %v1625_v55 }
  0x81   : > { %837 = vmatpush.msrb.mxu0 %v1989_v24  ;;  %908 = vmatpush.msrb.mxu1 %v1517_v36  ;;  %v1992_v36 = vand.u32 4294901760, %v1647_v61 }
  0x82   : > { %455 = vmatmul.f32.gmra.mxu0 %v454_v37  ;;  %744 = vmatmul.f32.vlgmr.msrb.gmra.mxu3 %v428_v63 }
  0x83   : > { %675 = vmatmul.f32.gmra.mxu2 %v1739_v1  ;;  %841 = vmatpush.msrb.mxu0 %v1990_v33 }
  0x84   : > { %910 = vmatpush.msrb.mxu1 %v1541_v47  ;;  %v1994_v47 = vand.u32 4294901760, %v1684_v46 }
  0x85   : > { %600 = vmatmul.f32.gmra.mxu1 %v1797_v27  ;;  %845 = vmatpush.msrb.mxu0 %v1991_v35 }
  0x86   : > { %912 = vmatpush.msrb.mxu1 %v1579_v0 }
  0x87   : > { %849 = vmatpush.msrb.mxu0 %v1992_v36 }
  0x88   : > { %914 = vmatpush.msrb.mxu1 %v1593_v8 }
  0x89   : > { %853 = vmatpush.msrb.mxu0 %v1993_v48 }
  0x8a   : > { %916 = vmatpush.msrb.mxu1 %v1612_v32  ;;  %750 = vmatmul.f32.gmra.mxu3 %v436_v50 }
  0x8b   : > { %680 = vmatmul.f32.gmra.mxu2 %v1783_v54  ;;  %855 = vmatmul.f32.vlgmr.msrb.gmra.mxu0 %v1710_v13 }
  0x8c   : > { %918 = vmatpush.msrb.mxu1 %v1625_v55 }
  0x8d   : > { %920 = vmatmul.f32.vlgmr.msrb.gmra.mxu1 %v1710_v13 }
  0x92   : > { %756 = vmatmul.f32.gmra.mxu3 %v444_v4 }
  0x93   : > { %685 = vmatmul.f32.gmra.mxu2 %v451_v20  ;;  %859 = vmatmul.f32.gmra.mxu0 %v1723_v12 }
  0x95   : > { %924 = vmatmul.f32.gmra.mxu1 %v1723_v12 }
  0x9a   : > { %762 = vmatmul.f32.gmra.mxu3 %v452_v41 }
  0x9b   : > { %690 = vmatmul.f32.gmra.mxu2 %v1684_v46  ;;  %863 = vmatmul.f32.gmra.mxu0 %v1770_v60  ;;  %v1911_v46 = vstv %s392_s23 }
  0x9d   : > { %928 = vmatmul.f32.gmra.mxu1 %v1770_v60 }
  0xa2   : > { %768 = vmatmul.f32.gmra.mxu3 %v1994_v47 }
  0xa3   : > { %695 = vmatmul.f32.gmra.mxu2 %v1714_v40  ;;  %867 = vmatmul.f32.gmra.mxu0 %v1797_v27 }
  0xa5   : > { %932 = vmatmul.f32.gmra.mxu1 %v1797_v27 }
  0xaa   : > { %774 = vmatmul.f32.gmra.mxu3 %v468_v34 }
  0xab   : > { %700 = vmatmul.f32.gmra.mxu2 %v1728_v52  ;;  %871 = vmatmul.f32.gmra.mxu0 %v1670_v6 }
  0xad   : > { %936 = vmatmul.f32.gmra.mxu1 %v1670_v6 }
  0xb2   : > { %780 = vmatmul.f32.gmra.mxu3 %v476_v26 }
  0xb3   : > { %705 = vmatmul.f32.gmra.mxu2 %v1760_v22  ;;  %875 = vmatmul.f32.gmra.mxu0 %v1703_v30 }
  0xb5   : > { %940 = vmatmul.f32.gmra.mxu1 %v1703_v30 }
  0xba   : > { %786 = vmatmul.f32.gmra.mxu3 %v484_v16 }
  0xbb   : > { %879 = vmatmul.f32.gmra.mxu0 %v1716_v19 }
  0xbd   : > { %944 = vmatmul.f32.gmra.mxu1 %v1716_v19 }
  0xc3   : > { %883 = vmatmul.f32.gmra.mxu0 %v1749_v14 }
  0xc5   : > { %948 = vmatmul.f32.gmra.mxu1 %v1749_v14 }
  0xde   : > { %v464_v53 = vpop.f32.mrf.mxu2 }
  0xdf   : > { %v465_v49 = vadd.f32 %v464_v53, %v1911_v46 }
  0xe0   : > { %v432_v59 = vpop.f32.mrf.mxu0 }
  0xe1   : > { %v433_v31 = vadd.f32 %v432_v59, %v1911_v46 }
  0xe2   : > { %v589_v0 = vpop.f32.mrf.mxu1 }
  0xe3   : > { %v590_v13 = vadd.f32 %v589_v0, %v433_v31 }
  0xe4   : > { %v1895_v61 = vpop.f32.mrf.mxu3 }
  0xe5   : > { %v606_v42 = vadd.f32 %v1895_v61, %v465_v49 }
  0xe6   : > { %v1897_v2 = vpop.f32.mrf.mxu2 }
  0xe7   : > { %v473_v48 = vadd.f32 %v1897_v2, %v1911_v46 }
  0xea   : > { %v440_v32 = vpop.f32.mrf.mxu0 }
  0xeb   : > { %v441_v39 = vadd.f32 %v440_v32, %v1911_v46 }
  0xec   : > { %v1899_v8 = vpop.f32.mrf.mxu3  ;;  %v593_v55 = vpop.f32.mrf.mxu1 }
  0xed   : > { %v594_v45 = vadd.f32 %v593_v55, %v441_v39  ;;  %v610_v32 = vadd.f32 %v1899_v8, %v473_v48 }
  0xee   : > { %v1901_v43 = vpop.f32.mrf.mxu2 }
  0xef   : > { %v481_v31 = vadd.f32 %v1901_v43, %v1911_v46 }
  0xf4   : > { %v1903_v56 = vpop.f32.mrf.mxu3 }
  0xf6   : > { %v1905_v12 = vpop.f32.mrf.mxu2  ;;  %v448_v62 = vpop.f32.mrf.mxu0 }
  0xf7   : > { %v449_v58 = vadd.f32 %v448_v62, %v1911_v46 }
  0xf9   : > { %v597_v6 = vpop.f32.mrf.mxu1 }
  0xfa   : > { %v598_v60 = vadd.f32 %v597_v6, %v449_v58 }
  0xfc   : > { %v1907_v19 = vpop.f32.mrf.mxu3 }
  0xfe   : > { %v671_v40 = vpop.f32.mrf.mxu2 }
  0xff   : > { %v456_v30 = vpop.f32.mrf.mxu0  ;;  %v672_v52 = vadd.f32 %v671_v40, %v590_v13 }
 0x100   : > { %v457_v3 = vadd.f32 %v456_v30, %v1911_v46 }
 0x102   : > { %v601_v34 = vpop.f32.mrf.mxu1 }
 0x103   : > { %v602_v9 = vadd.f32 %v601_v34, %v457_v3  ;;  %v614_v34 = vadd.f32 %v1903_v56, %v481_v31 }
 0x105   : > { %v745_v63 = vpop.f32.mrf.mxu3 }
 0x106   : > { %v676_v25 = vpop.f32.mrf.mxu2  ;;  %v746_v1 = vadd.f32 %v745_v63, %v672_v52 }
 0x107   : > { %v677_v21 = vadd.f32 %v676_v25, %v594_v45  ;;  %v489_v25 = vadd.f32 %v1905_v12, %v1911_v46 }
 0x108   : > { %v856_v7 = vpop.f32.mrf.mxu0 }
 0x109   : > { %v857_v44 = vadd.f32 %v856_v7, %v746_v1  ;;  %v618_v45 = vadd.f32 %v1907_v19, %v489_v25 }
 0x10a   : > { %v921_v26 = vpop.f32.mrf.mxu1 }
 0x10b   : > { %v922_v14 = vadd.f32 %v921_v26, %v857_v44 }
 0x10d   : > { %953 = vst.msk [vmem:[%s1918_s21] sm:$0xff] %vm952_vm0, %v922_v14  ;;  %v751_v50 = vpop.f32.mrf.mxu3 }
 0x10e   : > { %v681_v57 = vpop.f32.mrf.mxu2  ;;  %v752_v15 = vadd.f32 %v751_v50, %v677_v21 }
 0x10f   : > { %v682_v23 = vadd.f32 %v681_v57, %v598_v60 }
 0x110   : > { %v860_v22 = vpop.f32.mrf.mxu0 }
 0x111   : > { %v861_v51 = vadd.f32 %v860_v22, %v752_v15 }
 0x112   : > { %v925_v38 = vpop.f32.mrf.mxu1 }
 0x113   : > { %v926_v16 = vadd.f32 %v925_v38, %v861_v51 }
 0x115   : > { %954 = vst.msk [vmem:[%s1918_s21 + $0x8] sm:$0xff] %vm952_vm0, %v926_v16  ;;  %v757_v54 = vpop.f32.mrf.mxu3 }
 0x116   : > { %v686_v18 = vpop.f32.mrf.mxu2  ;;  %v758_v4 = vadd.f32 %v757_v54, %v682_v23 }
 0x117   : > { %v687_v29 = vadd.f32 %v686_v18, %v602_v9 }
 0x118   : > { %v864_v27 = vpop.f32.mrf.mxu0 }
 0x119   : > { %v865_v5 = vadd.f32 %v864_v27, %v758_v4 }
 0x11a   : > { %v929_v20 = vpop.f32.mrf.mxu1 }
 0x11b   : > { %v930_v28 = vadd.f32 %v929_v20, %v865_v5 }
 0x11d   : > { %955 = vst.msk [vmem:[%s1918_s21 + $0x10] sm:$0xff] %vm952_vm0, %v930_v28  ;;  %v763_v41 = vpop.f32.mrf.mxu3 }
 0x11e   : > { %v691_v10 = vpop.f32.mrf.mxu2  ;;  %v764_v11 = vadd.f32 %v763_v41, %v687_v29 }
 0x11f   : > { %v692_v35 = vadd.f32 %v691_v10, %v606_v42 }
 0x120   : > { %v868_v17 = vpop.f32.mrf.mxu0 }
 0x121   : > { %v869_v37 = vadd.f32 %v868_v17, %v764_v11 }
 0x122   : > { %v933_v24 = vpop.f32.mrf.mxu1 }
 0x123   : > { %v934_v33 = vadd.f32 %v933_v24, %v869_v37 }
 0x125   : > { %956 = vst.msk [vmem:[%s1918_s21 + $0x18] sm:$0xff] %vm952_vm0, %v934_v33  ;;  %v769_v36 = vpop.f32.mrf.mxu3 }
 0x126   : > { %v696_v47 = vpop.f32.mrf.mxu2  ;;  %v770_v59 = vadd.f32 %v769_v36, %v692_v35 }
 0x127   : > { %v697_v6 = vadd.f32 %v696_v47, %v610_v32 }
 0x128   : > { %v872_v0 = vpop.f32.mrf.mxu0 }
 0x129   : > { %v873_v53 = vadd.f32 %v872_v0, %v770_v59 }
 0x12a   : > { %v937_v55 = vpop.f32.mrf.mxu1 }
 0x12b   : > { %v938_v62 = vadd.f32 %v937_v55, %v873_v53 }
 0x12d   : > { %957 = vst.msk [vmem:[%s1918_s21 + $0x20] sm:$0xff] %vm952_vm0, %v938_v62  ;;  %v775_v61 = vpop.f32.mrf.mxu3 }
 0x12e   : > { %v776_v40 = vadd.f32 %v775_v61, %v697_v6  ;;  %v701_v30 = vpop.f32.mrf.mxu2 }
 0x12f   : > { %v702_v39 = vadd.f32 %v701_v30, %v614_v34 }
 0x130   : > { %v876_v13 = vpop.f32.mrf.mxu0 }
 0x131   : > { %v877_v2 = vadd.f32 %v876_v13, %v776_v40 }
 0x132   : > { %v941_v52 = vpop.f32.mrf.mxu1 }
 0x133   : > { %v942_v63 = vadd.f32 %v941_v52, %v877_v2 }
 0x135   : > { %958 = vst.msk [vmem:[%s1918_s21 + $0x28] sm:$0xff] %vm952_vm0, %v942_v63  ;;  %v781_v8 = vpop.f32.mrf.mxu3 }
 0x136   : > { %v782_v1 = vadd.f32 %v781_v8, %v702_v39  ;;  %v706_v43 = vpop.f32.mrf.mxu2 }
 0x137   : > { %v707_v21 = vadd.f32 %v706_v43, %v618_v45 }
 0x138   : > { %v880_v7 = vpop.f32.mrf.mxu0 }
 0x139   : > { %v881_v44 = vadd.f32 %v880_v7, %v782_v1 }
 0x13a   : > { %v945_v26 = vpop.f32.mrf.mxu1 }
 0x13b   : > { %v946_v14 = vadd.f32 %v945_v26, %v881_v44 }
 0x13d   : > { %959 = vst.msk [vmem:[%s1918_s21 + $0x30] sm:$0xff] %vm952_vm0, %v946_v14  ;;  %v787_v56 = vpop.f32.mrf.mxu3 }
 0x13e   : > { %v788_v50 = vadd.f32 %v787_v56, %v707_v21 }
 0x140   : > { %v884_v58 = vpop.f32.mrf.mxu0 }
 0x141   : > { %v885_v57 = vadd.f32 %v884_v58, %v788_v50 }
 0x142   : > { %v949_v15 = vpop.f32.mrf.mxu1 }
 0x143   : > { %v950_v22 = vadd.f32 %v949_v15, %v885_v57 }
 0x145   : > { %960 = vst.msk [vmem:[%s1918_s21 + $0x38] sm:$0xff] %vm952_vm0, %v950_v22 }
 0x146 PF: > { %p20_p8 = scmp.ge.s32.totalorder %s1326_s27, 6   ;;  %s1995_s23 = smov %s1256_s24 }
 0x147   : > { %s1996_s24 = smov %s1260_s25  ;;  %s1997_s25 = smov %s1336_s30 }
 0x148   : > { %s1998_s26 = smov %s1326_s27  ;;  %22 = sbr.rel (!%p20_p8) target bundleno = 7 (0x7), region = 97 }
 0x14d   :  { %983 = vsyncpa [#allocation4], 1 }
 0x14e   :  { %985 = vsyncpa [#allocation4 + $0x1], 1 }
 0x14f   :  { %986 = vsyncpa [#allocation6], 1 }
 0x150   :  { %988 = vsyncpa [#allocation6 + $0x1], 1 }

</bundles_post_ra>
